<compile_context>
chip_gen: v5e
topology: v5e:2x2
jax: 0.10.0
libtpu: 0.0.40
codegen_flags: <defaults>
</compile_context>

<pallas_src>
import jax
import jax.numpy as jnp
from jax.experimental import pallas as pl
from jax.experimental.pallas import tpu as pltpu

INPUT_DIM = 1
OUTPUT_DIM = 1

LANE = 128                              # vreg lane width
SUBLANE = 8                             # f32 sublane count
TARGET_BLOCK_BYTES = 2 * 1024 * 1024    # ~2 MiB blocks -> 8 MiB total w/ double-buffering
MIN_PALLAS_ELEMS = 2048                 # below this, launch overhead dominates -> fused XLA


def scalar_affine_kernel(w_ref, b_ref, x_ref, o_ref):
    # w_ref, b_ref: (1,) f32 scalars in SMEM (cheap scalar reads, no VMEM DMA).
    # x_ref, o_ref: (tile_rows, lane) f32 blocks in VMEM (lane-dense).
    w = w_ref[0]
    b = b_ref[0]
    # Pure VPU multiply-add; out-of-bounds rows of a ragged last block are
    # masked on writeback by Pallas, so garbage there is harmless.
    o_ref[...] = (x_ref[...] * w + b).astype(o_ref.dtype)


def _choose_tiling(n):
    """Pick (lane, rows, tile_rows, grid_steps) for a free (rows, lane) view."""
    lane = LANE
    for cand in (1024, 512, 256):       # widest lane dim dividing n -> widest vst/DMA
        if n % cand == 0:
            lane = cand
            break
    rows = n // lane

    tile_rows = max(SUBLANE, TARGET_BLOCK_BYTES // (lane * 4))   # ~2 MiB f32 block
    # Keep >= 2 grid steps when there is enough data so the "parallel" axis
    # actually shards across both v7x TensorCores (no-op on v5e/v6e).
    half_rows = pl.cdiv(rows, 2)
    half_rows = pl.cdiv(half_rows, SUBLANE) * SUBLANE
    tile_rows = min(tile_rows, half_rows)
    if tile_rows >= rows:
        tile_rows = rows                # single block; block == full dim is legal
    return lane, rows, tile_rows, pl.cdiv(rows, tile_rows)


def linear_regression_forward(x, w, b):
    """Pallas implementation of nn.Linear(1, 1)(x): y = x @ W^T + b."""
    n, d_in = x.shape
    d_out = w.shape[0]
    assert d_in == INPUT_DIM and d_out == OUTPUT_DIM, \
        "kernel is specialized for input_dim = output_dim = 1"

    w_s = w.reshape(1).astype(jnp.float32)     # scalar weight
    b_s = b.reshape(1).astype(jnp.float32)     # scalar bias

    # Fast path: tiny batches or batches not a multiple of 128 elements.
    # A single fused XLA elementwise op is already at the HBM roofline for this
    # memory-bound op and avoids any padding / slicing traffic.
    if n < MIN_PALLAS_ELEMS or n % LANE != 0:
        return (x * w_s[0] + b_s[0]).astype(x.dtype)

    lane, rows, tile_rows, grid_steps = _choose_tiling(n)

    # Free contiguous view (no pad, no copy): (n, 1) -> (rows, lane), lane-dense.
    x_slab = x.reshape(rows, lane)

    y_slab = pl.pallas_call(
        scalar_affine_kernel,
        out_shape=jax.ShapeDtypeStruct((rows, lane), x.dtype),
        grid=(grid_steps,),
        in_specs=[
            pl.BlockSpec(memory_space=pltpu.MemorySpace.SMEM),    # w (scalar)
            pl.BlockSpec(memory_space=pltpu.MemorySpace.SMEM),    # b (scalar)
            pl.BlockSpec((tile_rows, lane), lambda i: (i, 0)),    # x block
        ],
        out_specs=pl.BlockSpec((tile_rows, lane), lambda i: (i, 0)),
        compiler_params=pltpu.CompilerParams(
            dimension_semantics=("parallel",),   # shards across v7x's 2 TensorCores
        ),
    )(w_s, b_s, x_slab)

    # Free view back to (batch, out_features); no slicing needed (no padding).
    return y_slab.reshape(n, d_out)


if __name__ == "__main__":
    key = jax.random.PRNGKey(0)
    kx1, kx2, kx3, kw, kb = jax.random.split(key, 5)

    # Deterministic params mimicking nn.Linear's uniform(-1/sqrt(in), 1/sqrt(in))
    bound = 1.0 / (INPUT_DIM ** 0.5)
    w = jax.random.uniform(kw, (OUTPUT_DIM, INPUT_DIM), jnp.float32, -bound, bound)
    b = jax.random.uniform(kb, (OUTPUT_DIM,), jnp.float32, -bound, bound)

    # 1) Small, module-consistent demo batch (takes the fused-XLA fast path).
    x_small = jax.random.normal(kx1, (8, INPUT_DIM), jnp.float32)
    y_small = jax.block_until_ready(linear_regression_forward(x_small, w, b))

    # 2) Batch exercising the Pallas kernel with a wide (1024) lane slab, 1 block.
    x_mid = jax.random.normal(kx2, (4096, INPUT_DIM), jnp.float32)
    y_mid = jax.block_until_ready(linear_regression_forward(x_mid, w, b))

    # 3) Batch exercising the multi-step grid + masked ragged last block
    #    (8576 = 67 * 128 rows of 128 lanes -> grid of 2 with a partial block).
    x_big = jax.random.normal(kx3, (8576, INPUT_DIM), jnp.float32)
    y_big = jax.block_until_ready(linear_regression_forward(x_big, w, b))

    # Reference checks against plain JAX (same math as nn.Linear).
    for x_, y_ in ((x_small, y_small), (x_mid, y_mid), (x_big, y_big)):
        y_ref = x_ @ w.T + b
        assert y_.shape == y_ref.shape
        assert jnp.allclose(y_, y_ref, atol=1e-5, rtol=1e-5)

    print("KERNEL_OK")
</pallas_src>

<mosaic_0001>
module attributes {stable_mosaic.version = 11 : i64} {
  func.func @scalar_affine_kernel(%arg0: i32, %arg1: memref<1xf32, #tpu.memory_space<smem>>, %arg2: memref<1xf32, #tpu.memory_space<smem>>, %arg3: memref<4x1024xf32, #tpu.memory_space<vmem>>, %arg4: memref<4x1024xf32, #tpu.memory_space<vmem>>) attributes {dimension_semantics = [#tpu.dimension_semantics<parallel>], iteration_bounds = array<i64: 1>, scalar_prefetch = 0 : i64, scratch_operands = 0 : i64, tpu.core_type = #tpu.core_type<tc>, window_params = [{transform_indices = @transform_0, window_bounds = array<i64: 1>}, {transform_indices = @transform_1, window_bounds = array<i64: 1>}, {transform_indices = @transform_2, window_bounds = array<i64: 4, 1024>}, {transform_indices = @transform_3, window_bounds = array<i64: 4, 1024>}]} {
    %c0 = arith.constant 0 : index
    %0 = memref.load %arg1[%c0] : memref<1xf32, #tpu.memory_space<smem>>
    %c0_0 = arith.constant 0 : index
    %1 = memref.load %arg2[%c0_0] : memref<1xf32, #tpu.memory_space<smem>>
    %c0_1 = arith.constant 0 : index
    %c0_2 = arith.constant 0 : index
    %2 = vector.load %arg3[%c0_1, %c0_2] : memref<4x1024xf32, #tpu.memory_space<vmem>>, vector<4x1024xf32>
    %3 = vector.broadcast %0 : f32 to vector<4x1024xf32>
    %4 = arith.mulf %2, %3 : vector<4x1024xf32>
    %5 = vector.broadcast %1 : f32 to vector<4x1024xf32>
    %6 = arith.addf %4, %5 : vector<4x1024xf32>
    %c0_3 = arith.constant 0 : index
    %c0_4 = arith.constant 0 : index
    %7 = vector.load %arg4[%c0_3, %c0_4] : memref<4x1024xf32, #tpu.memory_space<vmem>>, vector<4x1024xf32>
    tpu.vector_store %arg4[%c0_3, %c0_4], %6 {strides = array<i32>} : memref<4x1024xf32, #tpu.memory_space<vmem>>, vector<4x1024xf32>,
    return
  }
  func.func @transform_0(%arg0: i32) -> i32 {
    %c0_i32 = arith.constant 0 : i32
    %c0_i32_0 = arith.constant 0 : i32
    return %c0_i32 : i32
  }
  func.func @transform_1(%arg0: i32) -> i32 {
    %c0_i32 = arith.constant 0 : i32
    %c0_i32_0 = arith.constant 0 : i32
    return %c0_i32 : i32
  }
  func.func @transform_2(%arg0: i32) -> (i32, i32) {
    %c0_i32 = arith.constant 0 : i32
    %c0_i32_0 = arith.constant 0 : i32
    return %arg0, %c0_i32 : i32, i32
  }
  func.func @transform_3(%arg0: i32) -> (i32, i32) {
    %c0_i32 = arith.constant 0 : i32
    %c0_i32_0 = arith.constant 0 : i32
    return %arg0, %c0_i32 : i32, i32
  }
}

</mosaic_0001>

<bundles_post_ra>
// kernel: tpu_custom_call.1
= control target key start
LH: loop header
LB: loop body
LE: loop exit
PB: predicated region body
PF: predicated region fallthrough
CT: control target
= control target key end

     0   :  { %10 = vsyncpa [#allocation5], 0  ;;  %s156_s0 = inlined_call_operand.<no memory space> [shape: f32[1], index: 0, kind: input, shape index: {}]   ;;  %s157_s1 = inlined_call_operand.<no memory space> [shape: f32[1], index: 1, kind: input, shape index: {}]   ;;  %s158_s2 = inlined_call_operand.hbm [shape: f32[4,1024], index: 2, kind: input, shape index: {}]   ;;  %s159_s3 = inlined_call_operand.hbm [shape: f32[4,1024], index: 3, kind: output, shape index: {}]  }
   0x1   :  { %11 = vsyncpa [#allocation6], 0  ;;  %s21_s14 = sshll.u32 %s158_s2, 4  ;;  %s122_s15 = smov [#allocation4]   ;;  %s22_s14 = int_to_ptr.hbm [resolvable:$true] %s21_s14 }
   0x2   :  { %s23_s16 = sshll.u32 %s122_s15, 4  ;;  %s24_s16 = int_to_ptr.vmem [resolvable:$true] %s23_s16 }
   0x3   :  { %26 = dma.hbm_to_vmem [thread:$0]  %s22_s14, 512, %s24_s16, [#allocation5]  }
   0x4   :  { %118 = dma.done.wait [#allocation5], 512  }
   0x5   :  { %119 = vsyncadd [#allocation5], 4294966784  ;;  %v37_v0 = vstv %s156_s0  ;;  %v33_v1 = vld [vmem:[#allocation4] sm:$0xff]  ;;  %v42_v2 = vstv %s157_s1  ;;  %v34_v3 = vld [vmem:[#allocation4 + $0x8] sm:$0xff]  ;;  %s123_s2 = smov [#allocation7]   ;;  %s58_s0 = sshll.u32 %s159_s3, 4  ;;  %s59_s0 = int_to_ptr.hbm [resolvable:$true] %s58_s0 }
   0x6   :  { %v35_v4 = vld [vmem:[#allocation4 + $0x10] sm:$0xff]  ;;  %v38_v5 = vmul.f32 %v37_v0, %v33_v1  ;;  %v39_v6 = vmul.f32 %v37_v0, %v34_v3  ;;  %v36_v8 = vld [vmem:[#allocation4 + $0x18] sm:$0xff]  ;;  %s56_s21 = sshll.u32 %s123_s2, 4  ;;  %s57_s21 = int_to_ptr.vmem [resolvable:$true] %s56_s21 }
   0x7   :  { %v40_v7 = vmul.f32 %v37_v0, %v35_v4  ;;  %v41_v9 = vmul.f32 %v37_v0, %v36_v8 }
   0x8   :  { %v43_v10 = vadd.f32 %v42_v2, %v38_v5  ;;  %v44_v11 = vadd.f32 %v42_v2, %v39_v6 }
   0x9   :  { %v45_v12 = vadd.f32 %v42_v2, %v40_v7  ;;  %v46_v13 = vadd.f32 %v42_v2, %v41_v9 }
   0xa   :  { %47 = vst [vmem:[#allocation7] sm:$0xff] %v43_v10 }
   0xb   :  { %48 = vst [vmem:[#allocation7 + $0x8] sm:$0xff] %v44_v11 }
   0xc   :  { %49 = vst [vmem:[#allocation7 + $0x10] sm:$0xff] %v45_v12 }
   0xd   :  { %50 = vst [vmem:[#allocation7 + $0x18] sm:$0xff] %v46_v13 }
   0xe   :  { %61 = dma.vmem_to_hbm [thread:$0]  %s57_s21, 512, %s59_s0, [#allocation6]  }
   0xf   :  { %120 = dma.done.wait [#allocation6], 512  }
  0x10   :  { %121 = vsyncadd [#allocation6], 4294966784 }
  0x11   :  { %66 = vsyncpa [#allocation5], 1 }
  0x12   :  { %67 = vsyncpa [#allocation6], 1 }

</bundles_post_ra>
